<compile_context>
chip_gen: v6e
topology: v6e:2x2x1
jax: 0.10.0
libtpu: 0.0.40
codegen_flags: <defaults>
</compile_context>

<pallas_src>
import functools

import jax
import jax.numpy as jnp
from jax import lax
from jax.experimental import pallas as pl
from jax.experimental.pallas import tpu as pltpu


_VMEM_BLOCK_BUDGET = 24 * 1024 * 1024   # double-buffered block working set target (v7x-safe)
_VMEM_LIMIT_BYTES = 40 * 1024 * 1024    # > v5e/v6e scoped defaults, <= ~48 MiB v7x guidance


def _jacard_kernel(pred_ref, tgt_ref, out_ref, *, C, gi, s_tile, num_j, num_jp,
                   n_valid_imgs, s_valid, needs_row_mask, needs_lane_mask):
    """One grid step.

    pred_ref: (gi*C, s_tile) f32  -- gi images x C channels, image-major rows
    tgt_ref : (gi,   s_tile) i32
    out_ref : (gi,   s_tile) f32  -- per-image per-lane partial sums, resident over j
    """
    p = pl.program_id(0)            # spatial split (v7x megacore)
    i = pl.program_id(1)            # image row-block
    j = pl.program_id(2)            # spatial tile within this split
    jj = p * num_jp + j             # global spatial tile index

    @pl.when(j == 0)
    def _():
        out_ref[...] = jnp.zeros_like(out_ref)

    tgt = tgt_ref[...]              # (gi, s_tile) int32

    def channel(c):
        # channel c of every image in the block: rows c, c+C, ..., c+(gi-1)*C.
        return pred_ref[pl.ds(c, gi, stride=C), :]          # (gi, s_tile)

    # Per-image max over channels for a stable exp (never materialize the softmax divide).
    m = channel(0)
    for c in range(1, C):
        m = jnp.maximum(m, channel(c))

    sum_e = None
    tp = None
    for c in range(C):
        e_c = jnp.exp(channel(c) - m)                        # dominant EUP work, full vregs
        sum_e = e_c if sum_e is None else sum_e + e_c
        sel = jnp.where(tgt == c, e_c, 0.0)
        tp = sel if tp is None else tp + sel

    # jac = (1 - p_t) / (3 + p_t) with p_t = tp / sum_e  ->  one (gi, s_tile) divide.
    jac = (sum_e - tp) / (3.0 * sum_e + tp)

    if needs_row_mask:
        # Only emitted when the last image row-block overruns N (N not a multiple of gi).
        row = lax.broadcasted_iota(jnp.int32, jac.shape, 0)
        jac = jnp.where(i * gi + row < n_valid_imgs, jac, 0.0)

    if needs_lane_mask:
        # Mask padded lanes only on the ragged last spatial tile; all other tiles
        # accumulate unmasked (review item: free VALU savings).
        is_edge = jj == (num_j - 1)

        @pl.when(is_edge)
        def _():
            lane = lax.broadcasted_iota(jnp.int32, jac.shape, 1)
            out_ref[...] += jnp.where(jj * s_tile + lane < s_valid, jac, 0.0)

        @pl.when(jnp.logical_not(is_edge))
        def _():
            out_ref[...] += jac
    else:
        out_ref[...] += jac


def _pick_tiling(N, C, S):
    """Choose (images per row-block, spatial tile lanes, spatial tiling, split)."""
    # gi == N is always a legal block extent (equals the full dim); if we must go smaller,
    # gi has to be a multiple of 8 so pred (gi*C rows) and tgt (gi rows) blocks stay legal.
    gi = N if N <= 64 else 64

    def per_lane_bytes(g):
        # double-buffered pred + tgt input blocks, plus (conservatively) double-buffered
        # resident output block; everything is 4 bytes/elem (f32 / int32).
        return 4 * (2 * (g * C + g) + 2 * g)

    while gi > 8 and per_lane_bytes(gi) * 128 > _VMEM_BLOCK_BUDGET:
        gi = max(8, (gi // 2) // 8 * 8)

    lanes_pad = pl.cdiv(S, 128) * 128
    s_tile = max(128, (_VMEM_BLOCK_BUDGET // per_lane_bytes(gi)) // 128 * 128)
    s_tile = min(s_tile, lanes_pad)
    num_j = pl.cdiv(S, s_tile)

    # Prefer an even number of spatial tiles so the grid can be split across both v7x
    # TensorCores with zero duplicated work (costs at most one extra tiny grid step on
    # single-TC chips).
    if num_j == 1 and lanes_pad >= 256:
        s_tile = pl.cdiv(pl.cdiv(S, 128), 2) * 128
        num_j = pl.cdiv(S, s_tile)
    elif num_j > 1 and num_j % 2 == 1:
        s_alt = pl.cdiv(pl.cdiv(S, 128), num_j + 1) * 128
        if pl.cdiv(S, s_alt) % 2 == 0:
            s_tile, num_j = s_alt, pl.cdiv(S, s_alt)

    n_split = 2 if (num_j % 2 == 0 and num_j >= 2) else 1
    num_jp = num_j // n_split
    return gi, s_tile, num_j, num_jp, n_split


@jax.jit
def jacard_loss(prediction, target):
    """prediction: (N, C, H, W) float logits; target: (N, H, W) int class ids -> f32 scalar."""
    N, C, H, W = prediction.shape
    S = H * W

    gi, s_tile, num_j, num_jp, n_split = _pick_tiling(N, C, S)
    num_i = pl.cdiv(N, gi)

    # Free, contiguous reshapes only: no pad / transpose copies through HBM.
    pred = prediction.reshape(N * C, S).astype(jnp.float32)
    tgt = target.reshape(N, S).astype(jnp.int32)

    kernel = functools.partial(
        _jacard_kernel,
        C=C, gi=gi, s_tile=s_tile, num_j=num_j, num_jp=num_jp,
        n_valid_imgs=N, s_valid=S,
        needs_row_mask=(num_i * gi != N),
        needs_lane_mask=(S % s_tile != 0),
    )

    partial_sums = pl.pallas_call(
        kernel,
        out_shape=jax.ShapeDtypeStruct((n_split, num_i * gi, s_tile), jnp.float32),
        grid_spec=pltpu.PrefetchScalarGridSpec(
            num_scalar_prefetch=0,
            grid=(n_split, num_i, num_jp),            # spatial reduction axis last
            in_specs=[
                # pred: gi images * C channels of sublane-dense rows per step
                pl.BlockSpec((gi * C, s_tile), lambda p, i, j: (i, p * num_jp + j)),
                # tgt: matching gi rows (no size-1 second-minor dim -> no 8x padding)
                pl.BlockSpec((gi, s_tile), lambda p, i, j: (i, p * num_jp + j)),
            ],
            # lane-dense per-image accumulator, resident across the spatial axis
            out_specs=pl.BlockSpec((None, gi, s_tile), lambda p, i, j: (p, i, 0)),
        ),
        compiler_params=pltpu.CompilerParams(
            dimension_semantics=("parallel", "parallel", "arbitrary"),
            vmem_limit_bytes=_VMEM_LIMIT_BYTES,
        ),
    )(pred, tgt)

    # Invalid rows / padded lanes were zeroed in-kernel, so a plain sum is exact.
    return jnp.sum(partial_sums) / jnp.float32(N * S)


def _reference(prediction, target):
    # Pure-JAX reference mirroring the PyTorch module (un-collapsed formula).
    p = jax.nn.softmax(prediction.astype(jnp.float32), axis=1)          # (N,C,H,W)
    y = jax.nn.one_hot(target, prediction.shape[1], axis=1, dtype=jnp.float32)
    tp = jnp.sum(y * p, axis=1)
    fn = jnp.sum(y * (1.0 - p), axis=1)
    fp = jnp.sum((1.0 - y) * p, axis=1)
    tversky = (tp + 1.0) / (tp + 0.5 * fn + 0.5 * fp + 1.0)
    dice = 1.0 - tversky                                                # gamma = 1
    return jnp.mean(dice / (2.0 - dice))


if __name__ == "__main__":
    key = jax.random.PRNGKey(0)
    ks = jax.random.split(key, 6)

    cases = [
        ((2, 4, 16, 16), 0, 1),   # primary case
        ((2, 4, 10, 10), 2, 3),   # ragged spatial size -> last-tile lane mask path
        ((4, 3, 24, 24), 4, 5),   # odd C (strided channel loads) + split spatial grid
    ]
    for shape, kp, kt in cases:
        N, C, H, W = shape
        prediction = jax.random.normal(ks[kp], shape, dtype=jnp.float32)
        target = jax.random.randint(ks[kt], (N, H, W), 0, C, dtype=jnp.int32)
        loss = jacard_loss(prediction, target)
        jax.block_until_ready(loss)
        ref = _reference(prediction, target)
        assert jnp.allclose(loss, ref, atol=1e-5, rtol=1e-5), (shape, loss, ref)

    print("KERNEL_OK")
</pallas_src>

<mosaic_0001>
module attributes {stable_mosaic.version = 11 : i64} {
  func.func @_jacard_kernel(%arg0: i32, %arg1: i32, %arg2: i32, %arg3: memref<8x128xf32, #tpu.memory_space<vmem>>, %arg4: memref<2x128xi32, #tpu.memory_space<vmem>>, %arg5: memref<1x2x128xf32, #tpu.memory_space<vmem>>) attributes {dimension_semantics = [#tpu.dimension_semantics<parallel>, #tpu.dimension_semantics<parallel>, #tpu.dimension_semantics<arbitrary>], iteration_bounds = array<i64: 2, 1, 1>, scalar_prefetch = 0 : i64, scratch_operands = 0 : i64, tpu.core_type = #tpu.core_type<tc>, window_params = [{transform_indices = @transform_0, window_bounds = array<i64: 8, 128>}, {transform_indices = @transform_1, window_bounds = array<i64: 2, 128>}, {transform_indices = @transform_2, window_bounds = array<i64: 1, 2, 128>}]} {
    %c0_i32 = arith.constant 0 : i32
    %0 = arith.cmpi eq, %arg2, %c0_i32 : i32
    %1 = arith.extui %0 : i1 to i32
    %c0_i32_0 = arith.constant 0 : i32
    %2 = arith.cmpi ne, %1, %c0_i32_0 : i32
    scf.if %2 {
      %cst_26 = arith.constant 0.000000e+00 : f32
      %56 = vector.broadcast %cst_26 : f32 to vector<2x128xf32>
      %c0_27 = arith.constant 0 : index
      %c0_28 = arith.constant 0 : index
      %c0_29 = arith.constant 0 : index
      %57 = vector.load %arg5[%c0_27, %c0_28, %c0_29] : memref<1x2x128xf32, #tpu.memory_space<vmem>>, vector<1x2x128xf32>
      %58 = vector.shape_cast %57 : vector<1x2x128xf32> to vector<2x128xf32>
      %59 = vector.shape_cast %56 : vector<2x128xf32> to vector<1x2x128xf32>
      tpu.vector_store %arg5[%c0_27, %c0_28, %c0_29], %59 {strides = array<i32>} : memref<1x2x128xf32, #tpu.memory_space<vmem>>, vector<1x2x128xf32>,
    } else {
    }
    %c0 = arith.constant 0 : index
    %c0_1 = arith.constant 0 : index
    %3 = vector.load %arg4[%c0, %c0_1] : memref<2x128xi32, #tpu.memory_space<vmem>>, vector<2x128xi32>
    %c0_2 = arith.constant 0 : index
    %c0_3 = arith.constant 0 : index
    %4 = tpu.strided_load %arg3[%c0_2, %c0_3] {strides = array<i32: 4, 1>} : memref<8x128xf32, #tpu.memory_space<vmem>>, vector<2x128xf32>
    %c1 = arith.constant 1 : index
    %c0_4 = arith.constant 0 : index
    %5 = tpu.strided_load %arg3[%c1, %c0_4] {strides = array<i32: 4, 1>} : memref<8x128xf32, #tpu.memory_space<vmem>>, vector<2x128xf32>
    %6 = arith.maximumf %4, %5 : vector<2x128xf32>
    %c2 = arith.constant 2 : index
    %c0_5 = arith.constant 0 : index
    %7 = tpu.strided_load %arg3[%c2, %c0_5] {strides = array<i32: 4, 1>} : memref<8x128xf32, #tpu.memory_space<vmem>>, vector<2x128xf32>
    %8 = arith.maximumf %6, %7 : vector<2x128xf32>
    %c3 = arith.constant 3 : index
    %c0_6 = arith.constant 0 : index
    %9 = tpu.strided_load %arg3[%c3, %c0_6] {strides = array<i32: 4, 1>} : memref<8x128xf32, #tpu.memory_space<vmem>>, vector<2x128xf32>
    %10 = arith.maximumf %8, %9 : vector<2x128xf32>
    %c0_7 = arith.constant 0 : index
    %c0_8 = arith.constant 0 : index
    %11 = tpu.strided_load %arg3[%c0_7, %c0_8] {strides = array<i32: 4, 1>} : memref<8x128xf32, #tpu.memory_space<vmem>>, vector<2x128xf32>
    %12 = arith.subf %11, %10 : vector<2x128xf32>
    %13 = math.exp %12 : vector<2x128xf32>
    %c0_i32_9 = arith.constant 0 : i32
    %14 = vector.broadcast %c0_i32_9 : i32 to vector<2x128xi32>
    %15 = arith.cmpi eq, %3, %14 : vector<2x128xi32>
    %cst = arith.constant 0.000000e+00 : f32
    %16 = vector.broadcast %cst : f32 to vector<2x128xf32>
    %17 = arith.select %15, %13, %16 : vector<2x128xi1>, vector<2x128xf32>
    %c1_10 = arith.constant 1 : index
    %c0_11 = arith.constant 0 : index
    %18 = tpu.strided_load %arg3[%c1_10, %c0_11] {strides = array<i32: 4, 1>} : memref<8x128xf32, #tpu.memory_space<vmem>>, vector<2x128xf32>
    %19 = arith.subf %18, %10 : vector<2x128xf32>
    %20 = math.exp %19 : vector<2x128xf32>
    %21 = arith.addf %13, %20 : vector<2x128xf32>
    %c1_i32 = arith.constant 1 : i32
    %22 = vector.broadcast %c1_i32 : i32 to vector<2x128xi32>
    %23 = arith.cmpi eq, %3, %22 : vector<2x128xi32>
    %cst_12 = arith.constant 0.000000e+00 : f32
    %24 = vector.broadcast %cst_12 : f32 to vector<2x128xf32>
    %25 = arith.select %23, %20, %24 : vector<2x128xi1>, vector<2x128xf32>
    %26 = arith.addf %17, %25 : vector<2x128xf32>
    %c2_13 = arith.constant 2 : index
    %c0_14 = arith.constant 0 : index
    %27 = tpu.strided_load %arg3[%c2_13, %c0_14] {strides = array<i32: 4, 1>} : memref<8x128xf32, #tpu.memory_space<vmem>>, vector<2x128xf32>
    %28 = arith.subf %27, %10 : vector<2x128xf32>
    %29 = math.exp %28 : vector<2x128xf32>
    %30 = arith.addf %21, %29 : vector<2x128xf32>
    %c2_i32 = arith.constant 2 : i32
    %31 = vector.broadcast %c2_i32 : i32 to vector<2x128xi32>
    %32 = arith.cmpi eq, %3, %31 : vector<2x128xi32>
    %cst_15 = arith.constant 0.000000e+00 : f32
    %33 = vector.broadcast %cst_15 : f32 to vector<2x128xf32>
    %34 = arith.select %32, %29, %33 : vector<2x128xi1>, vector<2x128xf32>
    %35 = arith.addf %26, %34 : vector<2x128xf32>
    %c3_16 = arith.constant 3 : index
    %c0_17 = arith.constant 0 : index
    %36 = tpu.strided_load %arg3[%c3_16, %c0_17] {strides = array<i32: 4, 1>} : memref<8x128xf32, #tpu.memory_space<vmem>>, vector<2x128xf32>
    %37 = arith.subf %36, %10 : vector<2x128xf32>
    %38 = math.exp %37 : vector<2x128xf32>
    %39 = arith.addf %30, %38 : vector<2x128xf32>
    %c3_i32 = arith.constant 3 : i32
    %40 = vector.broadcast %c3_i32 : i32 to vector<2x128xi32>
    %41 = arith.cmpi eq, %3, %40 : vector<2x128xi32>
    %cst_18 = arith.constant 0.000000e+00 : f32
    %42 = vector.broadcast %cst_18 : f32 to vector<2x128xf32>
    %43 = arith.select %41, %38, %42 : vector<2x128xi1>, vector<2x128xf32>
    %44 = arith.addf %35, %43 : vector<2x128xf32>
    %45 = arith.subf %39, %44 : vector<2x128xf32>
    %cst_19 = arith.constant 3.000000e+00 : f32
    %46 = vector.broadcast %cst_19 : f32 to vector<2x128xf32>
    %47 = arith.mulf %46, %39 : vector<2x128xf32>
    %48 = arith.addf %47, %44 : vector<2x128xf32>
    %49 = arith.divf %45, %48 : vector<2x128xf32>
    %c0_20 = arith.constant 0 : index
    %c0_21 = arith.constant 0 : index
    %c0_22 = arith.constant 0 : index
    %50 = vector.load %arg5[%c0_20, %c0_21, %c0_22] : memref<1x2x128xf32, #tpu.memory_space<vmem>>, vector<1x2x128xf32>
    %51 = vector.shape_cast %50 : vector<1x2x128xf32> to vector<2x128xf32>
    %52 = arith.addf %51, %49 : vector<2x128xf32>
    %c0_23 = arith.constant 0 : index
    %c0_24 = arith.constant 0 : index
    %c0_25 = arith.constant 0 : index
    %53 = vector.load %arg5[%c0_23, %c0_24, %c0_25] : memref<1x2x128xf32, #tpu.memory_space<vmem>>, vector<1x2x128xf32>
    %54 = vector.shape_cast %53 : vector<1x2x128xf32> to vector<2x128xf32>
    %55 = vector.shape_cast %52 : vector<2x128xf32> to vector<1x2x128xf32>
    tpu.vector_store %arg5[%c0_23, %c0_24, %c0_25], %55 {strides = array<i32>} : memref<1x2x128xf32, #tpu.memory_space<vmem>>, vector<1x2x128xf32>,
    return
  }
  func.func @transform_0(%arg0: i32, %arg1: i32, %arg2: i32) -> (i32, i32) {
    %c1_i32 = arith.constant 1 : i32
    %0 = arith.muli %arg0, %c1_i32 : i32
    %1 = arith.addi %0, %arg2 : i32
    %c0_i32 = arith.constant 0 : i32
    return %arg1, %1 : i32, i32
  }
  func.func @transform_1(%arg0: i32, %arg1: i32, %arg2: i32) -> (i32, i32) {
    %c1_i32 = arith.constant 1 : i32
    %0 = arith.muli %arg0, %c1_i32 : i32
    %1 = arith.addi %0, %arg2 : i32
    %c0_i32 = arith.constant 0 : i32
    return %arg1, %1 : i32, i32
  }
  func.func @transform_2(%arg0: i32, %arg1: i32, %arg2: i32) -> (i32, i32, i32) {
    %c0_i32 = arith.constant 0 : i32
    %c0_i32_0 = arith.constant 0 : i32
    return %arg0, %arg1, %c0_i32 : i32, i32, i32
  }
}

</mosaic_0001>

<bundles_post_ra>
// kernel: jacard_loss.1
= control target key start
LH: loop header
LB: loop body
LE: loop exit
PB: predicated region body
PF: predicated region fallthrough
CT: control target
= control target key end

     0   :  { %s461_s9 = smov 0   ;;  %s463_s10 = smov 0   ;;  %s502_s0 = inlined_call_operand.vmem [shape: f32[8,256], index: 0, kind: input, shape index: {}]   ;;  %s503_s1 = inlined_call_operand.vmem [shape: s32[2,256], index: 1, kind: input, shape index: {}]   ;;  %s504_s2 = inlined_call_operand.vmem [shape: f32[2,2,128], index: 2, kind: output, shape index: {}]  }
   0x1   :  { %s465_s11 = smov 0  }
   0x2 LB: > { %s31_s12 = sadd.s32 1, %s439_s10  ;;  %p377_p0 = scmp.ge.s32.totalorder %s443_s11, 1  ;;  %s443_s11 = sphi %s465_s11, %s12_s11   ;;  %s439_s10 = sphi %s463_s10, %s506_s10   ;;  %s435_s9 = sphi %s461_s9, %s505_s9  }
   0x3   : > { %p33_p1 = scmp.ge.s32.totalorder %s31_s12, 2  ;;  %p161_p2 = scmp.lt.s32.totalorder %s443_s11, 3 }
   0x5   : > { %s508_s12 = smov (%p33_p1, %s31_s12), 0  ;;  %p162_p3 = pnand %p377_p0, %p161_p2 }
   0x6   : > { %p201_p4 = scmp.lt.s32.totalorder (!%p162_p3), %s435_s9, 1 }
   0x7   : > { %165 = sbr.rel (%p162_p3) target bundleno = 71 (0x47), region = 28 }
   0xc   : > { %s510_s9 = smov (!%p201_p4, %s435_s9), 1  ;;  %v445_v1 = vmov 0.0  }
   0xd   : > { %s378_s13 = sshll.u32 %s510_s9, 3  ;;  %s379_s17 = sshll.u32 %s510_s9, 1 }
   0xe   : > { %s206_s16 = scalar_lea.vmem %s502_s0, %s378_s13  ;;  %s485_s20 = scalar_lea.vmem %s504_s2, %s379_s17 }
   0xf   : > { %v231_v0 = vld [vmem:[%s206_s16] ss:$4 sm:$0x3]  ;;  %229 = vst [vmem:[%s485_s20] sm:$0x3] %v445_v1  ;;  %s216_s23 = scalar_lea.vmem %s503_s1, %s379_s17 }
  0x10   : > { %v381_v2 = vld [vmem:[%s206_s16 + $0x1] ss:$4 sm:$0x3]  ;;  %v382_v3 = vld [vmem:[%s206_s16 + $0x2] ss:$4 sm:$0x3] }
  0x11   : > { %v234_v4 = vmax.f32 %v231_v0, %v381_v2  ;;  %v383_v5 = vld [vmem:[%s206_s16 + $0x3] ss:$4 sm:$0x3]  ;;  %v230_v16 = vld [vmem:[%s216_s23] sm:$0x3] }
  0x12   : > { %vm244_vm0 = vcmp.eq.s32.totalorder %v230_v16, 0  ;;  %vm250_vm1 = vcmp.eq.s32.totalorder %v230_v16, 1  ;;  %vm257_vm2 = vcmp.eq.s32.totalorder %v230_v16, 2  ;;  %vm264_vm3 = vcmp.eq.s32.totalorder %v230_v16, 3 }
  0x13   : > { %v237_v6 = vmax.f32 %v234_v4, %v382_v3 }
  0x15   : > { %v240_v7 = vmax.f32 %v237_v6, %v383_v5 }
  0x16   : > { %v272_v35 = vld [vmem:[%s485_s20] sm:$0x3] }
  0x17   : > { %v241_v8 = vsub.f32 %v231_v0, %v240_v7  ;;  %v246_v9 = vsub.f32 %v381_v2, %v240_v7  ;;  %v253_v10 = vsub.f32 %v382_v3, %v240_v7  ;;  %v260_v11 = vsub.f32 %v383_v5, %v240_v7 }
  0x19   : > { %v242_v12 = vmul.f32 1.442695, %v241_v8  ;;  %v247_v13 = vmul.f32 1.442695, %v246_v9  ;;  %v254_v14 = vmul.f32 1.442695, %v253_v10 }
  0x1a   : > { %v261_v15 = vmul.f32 1.442695, %v260_v11 }
  0x1b   : > { %411 = vpow2.f32 %v242_v12 }
  0x1c   : > { %413 = vpow2.f32 %v247_v13 }
  0x1d   : > { %415 = vpow2.f32 %v254_v14 }
  0x1e   : > { %417 = vpow2.f32 %v261_v15 }
  0x28   : > { %v412_v17 = vpop.eup %411 }
  0x29   : > { %v414_v18 = vpop.eup %413  ;;  %v245_v19 = vsel %vm244_vm0, %v412_v17, 0.0 }
  0x2a   : > { %v416_v20 = vpop.eup %415  ;;  %v251_v21 = vsel %vm250_vm1, %v414_v18, 0.0  ;;  %v249_v22 = vadd.f32 %v414_v18, %v412_v17 }
  0x2b   : > { %v418_v23 = vpop.eup %417  ;;  %v252_v24 = vadd.f32 %v251_v21, %v245_v19  ;;  %v258_v25 = vsel %vm257_vm2, %v416_v20, 0.0 }
  0x2c   : > { %v265_v26 = vsel %vm264_vm3, %v418_v23, 0.0  ;;  %v256_v27 = vadd.f32 %v416_v20, %v249_v22 }
  0x2d   : > { %v259_v28 = vadd.f32 %v258_v25, %v252_v24 }
  0x2e   : > { %v263_v29 = vadd.f32 %v418_v23, %v256_v27 }
  0x2f   : > { %v266_v30 = vadd.f32 %v265_v26, %v259_v28 }
  0x30   : > { %v268_v31 = vmul.f32 3.0, %v263_v29 }
  0x31   : > { %v267_v33 = vsub.f32 %v263_v29, %v266_v30 }
  0x32   : > { %v269_v32 = vadd.f32 %v268_v31, %v266_v30 }
  0x34   : > { %419 = vrcp.f32 %v269_v32 }
  0x41   : > { %v420_v34 = vpop.eup %419 }
  0x42   : > { %v271_v36 = vmul.f32 %v420_v34, %v267_v33 }
  0x44   : > { %v273_v37 = vadd.f32 %v272_v35, %v271_v36 }
  0x46   : > { %274 = vst [vmem:[%s485_s20] sm:$0x3] %v273_v37 }
  0x47 PF: > { %s12_s11 = sadd.s32 1, %s443_s11   ;;  %s505_s9 = smov %s439_s10 }
  0x48   : > { %p9_p5 = scmp.ge.s32.totalorder %s12_s11, 4   ;;  %s506_s10 = smov %s508_s12 }
  0x4a   :  { %11 = sbr.rel (!%p9_p5) target bundleno = 2 (0x2), region = 68 }

</bundles_post_ra>
